<compile_context>
chip_gen: v6e
topology: v6e:2x2x1
jax: 0.10.0
libtpu: 0.0.40
codegen_flags: <defaults>
</compile_context>

<pallas_src>
import jax
import jax.numpy as jnp
from jax.experimental import pallas as pl
from jax.experimental.pallas import tpu as pltpu

# Logical dims (PyTorch module) and lane/sublane-padded dims used in-kernel.
D_IN, D_IN_PAD = 784, 896     # 7 * 128
H1, H1_PAD = 196, 256         # 2 * 128
H2, H2_PAD = 64, 128          # 1 * 128
C, C_PAD = 10, 16             # classes padded to a sublane multiple


def net_kernel(x_ref, w1_ref, b1_ref, w2_ref, b2_ref,
               wa_ref, ba_ref, wdt_ref, bd_ref, out_ref):
    # ---- embedding1 + ReLU : (N,896)bf16 @ (896,256)bf16 -> (N,256) f32 (MXU)
    h1 = jnp.dot(x_ref[...], w1_ref[...],
                 preferred_element_type=jnp.float32) + b1_ref[...]
    h1 = jnp.maximum(h1, 0.0)

    # ---- embedding2 + ReLU : (N,256)bf16 @ (256,128)bf16 -> (N,128) f32 (MXU)
    h2 = jnp.dot(h1.astype(jnp.bfloat16), w2_ref[...],
                 preferred_element_type=jnp.float32) + b2_ref[...]
    h2 = jnp.maximum(h2, 0.0)

    # ---- attention scores on VPU/XLU (no 1-column MXU matmul): (N,1)
    scores = jnp.sum(h2 * wa_ref[...], axis=-1, keepdims=True) + ba_ref[...]

    # ---- softmax over the batch dimension (axis 0)
    m = jnp.max(scores, axis=0, keepdims=True)
    e = jnp.exp(scores - m)
    attn = e * pl.reciprocal(jnp.sum(e, axis=0, keepdims=True), approx=False)

    # ---- context = sum_n attn[n] * h2[n]  -> (1,128)
    context = jnp.sum(h2 * attn, axis=0, keepdims=True)

    # ---- decoder on VPU/XLU: wdt is (16,128) in (out,in) layout (zero padded)
    #      logits[j] = sum_k context[k] * wdt[j,k] + bd[j]   -> (16,1) column
    logits = jnp.sum(context * wdt_ref[...], axis=-1, keepdims=True) + bd_ref[...]

    # mask padded class rows before log-softmax (Python literal, not a
    # captured jnp constant)
    row_ids = jax.lax.broadcasted_iota(jnp.int32, (C_PAD, 1), 0)
    logits = jnp.where(row_ids < C, logits, -1e30)

    # ---- log-softmax over classes (axis 0 of the column)
    lm = jnp.max(logits, axis=0, keepdims=True)
    shifted = logits - lm
    lse = jnp.log(jnp.sum(jnp.exp(shifted), axis=0, keepdims=True))
    out_ref[...] = shifted - lse


def net_forward(x_nchw, kernel_params):
    n = x_nchw.shape[0]
    x = x_nchw.reshape(n, D_IN).astype(jnp.float32)          # x.view(-1, 784)
    x = jnp.pad(x, ((0, 0), (0, D_IN_PAD - D_IN)))           # zero-pad to 896 lanes
    x = x.astype(jnp.bfloat16)                                # halves x DMA traffic

    w1, b1, w2, b2, wa, ba, wdt, bd = kernel_params
    vmem = pl.BlockSpec(memory_space=pltpu.MemorySpace.VMEM)

    out = pl.pallas_call(
        net_kernel,
        out_shape=jax.ShapeDtypeStruct((C_PAD, 1), jnp.float32),
        in_specs=[vmem] * 9,
        out_specs=vmem,
    )(x, w1, b1, w2, b2, wa, ba, wdt, bd)
    return out[:C, 0]                                          # (10,) log-probs


def init_params(key):
    """Logical (unpadded, f32) parameters, PyTorch-equivalent, stored (in,out)."""
    ks = jax.random.split(key, 8)

    def linear(kw, kb, fan_in, fan_out):
        bound = 1.0 / (fan_in ** 0.5)
        w = jax.random.uniform(kw, (fan_in, fan_out), jnp.float32, -bound, bound)
        b = jax.random.uniform(kb, (fan_out,), jnp.float32, -bound, bound)
        return w, b

    w1, b1 = linear(ks[0], ks[1], D_IN, H1)   # embedding1
    w2, b2 = linear(ks[2], ks[3], H1, H2)     # embedding2
    wa, ba = linear(ks[4], ks[5], H2, 1)      # attention
    wd, bd = linear(ks[6], ks[7], H2, C)      # decoder
    return (w1, b1, w2, b2, wa, ba, wd, bd)


def prepare_params(params):
    """Zero-pad to lane/sublane multiples and cast MXU operands to bf16."""
    w1, b1, w2, b2, wa, ba, wd, bd = params

    w1p = jnp.zeros((D_IN_PAD, H1_PAD), jnp.float32).at[:D_IN, :H1].set(w1)
    w1p = w1p.astype(jnp.bfloat16)
    b1p = jnp.zeros((1, H1_PAD), jnp.float32).at[0, :H1].set(b1)

    w2p = jnp.zeros((H1_PAD, H2_PAD), jnp.float32).at[:H1, :H2].set(w2)
    w2p = w2p.astype(jnp.bfloat16)
    b2p = jnp.zeros((1, H2_PAD), jnp.float32).at[0, :H2].set(b2)

    # attention weight as a padded (1,128) row, f32 (VPU work)
    wap = jnp.zeros((1, H2_PAD), jnp.float32).at[0, :H2].set(wa[:, 0])
    bap = ba.reshape(1, 1)

    # decoder weight in (out,in) layout padded to (16,128), bias as (16,1) column
    wdtp = jnp.zeros((C_PAD, H2_PAD), jnp.float32).at[:C, :H2].set(wd.T)
    bdp = jnp.zeros((C_PAD, 1), jnp.float32).at[:C, 0].set(bd)

    return (w1p, b1p, w2p, b2p, wap, bap, wdtp, bdp)


def net_reference(x_nchw, params):
    """Pure-JAX reference using the same bf16 matmul operands as the kernel."""
    w1, b1, w2, b2, wa, ba, wd, bd = params
    x = x_nchw.reshape(x_nchw.shape[0], D_IN).astype(jnp.float32)
    xb = x.astype(jnp.bfloat16)
    h1 = jax.nn.relu(jnp.dot(xb, w1.astype(jnp.bfloat16),
                             preferred_element_type=jnp.float32) + b1)
    h2 = jax.nn.relu(jnp.dot(h1.astype(jnp.bfloat16), w2.astype(jnp.bfloat16),
                             preferred_element_type=jnp.float32) + b2)
    scores = (h2 @ wa)[:, 0] + ba[0]
    attn = jax.nn.softmax(scores, axis=0)
    context = jnp.sum(h2 * attn[:, None], axis=0)
    logits = context @ wd + bd
    return jax.nn.log_softmax(logits, axis=-1)


if __name__ == "__main__":
    key = jax.random.PRNGKey(0)
    k_x, k_p = jax.random.split(key)

    # MNIST-like small batch: (N, C, H, W) = (8, 1, 28, 28)
    x = jax.random.normal(k_x, (8, 1, 28, 28), dtype=jnp.float32)
    params = init_params(k_p)
    kernel_params = prepare_params(params)

    out = net_forward(x, kernel_params)
    out = jax.block_until_ready(out)

    ref = net_reference(x, params)
    assert out.shape == (10,)
    # bf16 matmul operands => compare against matching-precision reference
    assert jnp.allclose(out, ref, atol=1e-3, rtol=1e-3), (out, ref)

    print("KERNEL_OK")
</pallas_src>

<mosaic_0001>
module attributes {stable_mosaic.version = 11 : i64} {
  func.func @net_kernel(%arg0: memref<8x896xbf16, #tpu.memory_space<vmem>>, %arg1: memref<896x256xbf16, #tpu.memory_space<vmem>>, %arg2: memref<1x256xf32, #tpu.memory_space<vmem>>, %arg3: memref<256x128xbf16, #tpu.memory_space<vmem>>, %arg4: memref<1x128xf32, #tpu.memory_space<vmem>>, %arg5: memref<1x128xf32, #tpu.memory_space<vmem>>, %arg6: memref<1x1xf32, #tpu.memory_space<vmem>>, %arg7: memref<16x128xf32, #tpu.memory_space<vmem>>, %arg8: memref<16x1xf32, #tpu.memory_space<vmem>>, %arg9: memref<16x1xf32, #tpu.memory_space<vmem>>) attributes {dimension_semantics = [], scalar_prefetch = 0 : i64, scratch_operands = 0 : i64, tpu.core_type = #tpu.core_type<tc>} {
    %c0 = arith.constant 0 : index
    %c0_0 = arith.constant 0 : index
    %0 = vector.load %arg0[%c0, %c0_0] : memref<8x896xbf16, #tpu.memory_space<vmem>>, vector<8x896xbf16>
    %c0_1 = arith.constant 0 : index
    %c0_2 = arith.constant 0 : index
    %1 = vector.load %arg1[%c0_1, %c0_2] : memref<896x256xbf16, #tpu.memory_space<vmem>>, vector<896x256xbf16>
    %cst = arith.constant dense<0.000000e+00> : vector<8x256xf32>
    %2 = tpu.matmul %0, %1, %cst {dimension_numbers = #tpu.dot_dimension_numbers<[1], [0], [0], [1], [0, 0, 1, 1], [], []>} : vector<8x896xbf16>, vector<896x256xbf16>, vector<8x256xf32> -> vector<8x256xf32>
    %c0_3 = arith.constant 0 : index
    %c0_4 = arith.constant 0 : index
    %3 = vector.load %arg2[%c0_3, %c0_4] : memref<1x256xf32, #tpu.memory_space<vmem>>, vector<1x256xf32>
    %4 = vector.broadcast %3 : vector<1x256xf32> to vector<8x256xf32>
    %5 = arith.addf %2, %4 : vector<8x256xf32>
    %cst_5 = arith.constant 0.000000e+00 : f32
    %6 = vector.broadcast %cst_5 : f32 to vector<8x256xf32>
    %7 = arith.maximumf %5, %6 : vector<8x256xf32>
    %8 = arith.truncf %7 : vector<8x256xf32> to vector<8x256xbf16>
    %c0_6 = arith.constant 0 : index
    %c0_7 = arith.constant 0 : index
    %9 = vector.load %arg3[%c0_6, %c0_7] : memref<256x128xbf16, #tpu.memory_space<vmem>>, vector<256x128xbf16>
    %cst_8 = arith.constant dense<0.000000e+00> : vector<8x128xf32>
    %10 = tpu.matmul %8, %9, %cst_8 {dimension_numbers = #tpu.dot_dimension_numbers<[1], [0], [0], [1], [0, 0, 1, 1], [], []>} : vector<8x256xbf16>, vector<256x128xbf16>, vector<8x128xf32> -> vector<8x128xf32>
    %c0_9 = arith.constant 0 : index
    %c0_10 = arith.constant 0 : index
    %11 = vector.load %arg4[%c0_9, %c0_10] : memref<1x128xf32, #tpu.memory_space<vmem>>, vector<1x128xf32>
    %12 = vector.broadcast %11 : vector<1x128xf32> to vector<8x128xf32>
    %13 = arith.addf %10, %12 : vector<8x128xf32>
    %cst_11 = arith.constant 0.000000e+00 : f32
    %14 = vector.broadcast %cst_11 : f32 to vector<8x128xf32>
    %15 = arith.maximumf %13, %14 : vector<8x128xf32>
    %c0_12 = arith.constant 0 : index
    %c0_13 = arith.constant 0 : index
    %16 = vector.load %arg5[%c0_12, %c0_13] : memref<1x128xf32, #tpu.memory_space<vmem>>, vector<1x128xf32>
    %17 = vector.broadcast %16 : vector<1x128xf32> to vector<8x128xf32>
    %18 = arith.mulf %15, %17 : vector<8x128xf32>
    %cst_14 = arith.constant dense<0.000000e+00> : vector<8xf32>
    %19 = vector.multi_reduction <add>, %18, %cst_14 [1] : vector<8x128xf32> to vector<8xf32>
    %20 = vector.shape_cast %19 : vector<8xf32> to vector<8x1xf32>
    %c0_15 = arith.constant 0 : index
    %c0_16 = arith.constant 0 : index
    %21 = vector.load %arg6[%c0_15, %c0_16] : memref<1x1xf32, #tpu.memory_space<vmem>>, vector<1x1xf32>
    %22 = vector.broadcast %21 : vector<1x1xf32> to vector<8x1xf32>
    %23 = arith.addf %20, %22 : vector<8x1xf32>
    %cst_17 = arith.constant dense<0xFF800000> : vector<1xf32>
    %24 = vector.multi_reduction <maximumf>, %23, %cst_17 [0] : vector<8x1xf32> to vector<1xf32>
    %25 = vector.shape_cast %24 : vector<1xf32> to vector<1x1xf32>
    %26 = vector.broadcast %25 : vector<1x1xf32> to vector<8x1xf32>
    %27 = arith.subf %23, %26 : vector<8x1xf32>
    %28 = math.exp %27 : vector<8x1xf32>
    %cst_18 = arith.constant dense<0.000000e+00> : vector<1xf32>
    %29 = vector.multi_reduction <add>, %28, %cst_18 [0] : vector<8x1xf32> to vector<1xf32>
    %30 = vector.shape_cast %29 : vector<1xf32> to vector<1x1xf32>
    %31 = tpu.reciprocal %30 : vector<1x1xf32> -> vector<1x1xf32>
    %32 = vector.broadcast %31 : vector<1x1xf32> to vector<8x1xf32>
    %33 = arith.mulf %28, %32 : vector<8x1xf32>
    %34 = vector.broadcast %33 : vector<8x1xf32> to vector<8x128xf32>
    %35 = arith.mulf %15, %34 : vector<8x128xf32>
    %cst_19 = arith.constant dense<0.000000e+00> : vector<128xf32>
    %36 = vector.multi_reduction <add>, %35, %cst_19 [0] : vector<8x128xf32> to vector<128xf32>
    %37 = vector.shape_cast %36 : vector<128xf32> to vector<1x128xf32>
    %c0_20 = arith.constant 0 : index
    %c0_21 = arith.constant 0 : index
    %38 = vector.load %arg7[%c0_20, %c0_21] : memref<16x128xf32, #tpu.memory_space<vmem>>, vector<16x128xf32>
    %39 = vector.broadcast %37 : vector<1x128xf32> to vector<16x128xf32>
    %40 = arith.mulf %39, %38 : vector<16x128xf32>
    %cst_22 = arith.constant dense<0.000000e+00> : vector<16xf32>
    %41 = vector.multi_reduction <add>, %40, %cst_22 [1] : vector<16x128xf32> to vector<16xf32>
    %42 = vector.shape_cast %41 : vector<16xf32> to vector<16x1xf32>
    %c0_23 = arith.constant 0 : index
    %c0_24 = arith.constant 0 : index
    %43 = vector.load %arg8[%c0_23, %c0_24] : memref<16x1xf32, #tpu.memory_space<vmem>>, vector<16x1xf32>
    %44 = arith.addf %42, %43 : vector<16x1xf32>
    %45 = tpu.iota {dimensions = array<i32: 0>} : vector<16x1xi32>
    %c10_i32 = arith.constant 10 : i32
    %46 = vector.broadcast %c10_i32 : i32 to vector<16x1xi32>
    %47 = arith.cmpi slt, %45, %46 : vector<16x1xi32>
    %cst_25 = arith.constant -1.000000e+30 : f32
    %48 = vector.broadcast %cst_25 : f32 to vector<16x1xf32>
    %49 = arith.select %47, %44, %48 : vector<16x1xi1>, vector<16x1xf32>
    %cst_26 = arith.constant dense<0xFF800000> : vector<1xf32>
    %50 = vector.multi_reduction <maximumf>, %49, %cst_26 [0] : vector<16x1xf32> to vector<1xf32>
    %51 = vector.shape_cast %50 : vector<1xf32> to vector<1x1xf32>
    %52 = vector.broadcast %51 : vector<1x1xf32> to vector<16x1xf32>
    %53 = arith.subf %49, %52 : vector<16x1xf32>
    %54 = math.exp %53 : vector<16x1xf32>
    %cst_27 = arith.constant dense<0.000000e+00> : vector<1xf32>
    %55 = vector.multi_reduction <add>, %54, %cst_27 [0] : vector<16x1xf32> to vector<1xf32>
    %56 = vector.shape_cast %55 : vector<1xf32> to vector<1x1xf32>
    %57 = math.log %56 : vector<1x1xf32>
    %58 = vector.broadcast %57 : vector<1x1xf32> to vector<16x1xf32>
    %59 = arith.subf %53, %58 : vector<16x1xf32>
    %c0_28 = arith.constant 0 : index
    %c0_29 = arith.constant 0 : index
    %60 = vector.load %arg9[%c0_28, %c0_29] : memref<16x1xf32, #tpu.memory_space<vmem>>, vector<16x1xf32>
    tpu.vector_store %arg9[%c0_28, %c0_29], %59 {strides = array<i32>} : memref<16x1xf32, #tpu.memory_space<vmem>>, vector<16x1xf32>,
    return
  }
}

</mosaic_0001>

<bundles_post_ra>
// kernel: tpu_custom_call.1
= control target key start
LH: loop header
LB: loop body
LE: loop exit
PB: predicated region body
PF: predicated region fallthrough
CT: control target
= control target key end

     0   :  { %s1788_s0 = inlined_call_operand.hbm [shape: bf16[8,896], index: 0, kind: input, shape index: {}]   ;;  %s1789_s1 = inlined_call_operand.hbm [shape: bf16[896,256], index: 1, kind: input, shape index: {}]   ;;  %s1790_s2 = inlined_call_operand.vmem [shape: f32[1,256], index: 2, kind: input, shape index: {}]   ;;  %s1791_s3 = inlined_call_operand.hbm [shape: bf16[256,128], index: 3, kind: input, shape index: {}]   ;;  %s1792_s4 = inlined_call_operand.vmem [shape: f32[1,128], index: 4, kind: input, shape index: {}]   ;;  %s1793_s5 = inlined_call_operand.vmem [shape: f32[1,128], index: 5, kind: input, shape index: {}]   ;;  %s1794_s6 = inlined_call_operand.<no memory space> [shape: f32[1,1], index: 6, kind: input, shape index: {}]   ;;  %s1795_s7 = inlined_call_operand.vmem [shape: f32[16,128], index: 7, kind: input, shape index: {}]   ;;  %s1796_s8 = inlined_call_operand.vmem [shape: f32[16,1], index: 8, kind: input, shape index: {}]   ;;  %s1797_s9 = inlined_call_operand.vmem [shape: f32[16,1], index: 9, kind: output, shape index: {}]  }
   0x1   :  { %v14_v0 = vstv %s1794_s6 }
   0x2   :  { %15 = vst [vmem:[#allocation2] sm:$0x1] %v14_v0 }
   0x3   :  { %16 = vsyncpa [#allocation4], 0 }
   0x4   :  { %17 = vsyncpa [#allocation6], 0  ;;  %s1670_s11 = smov [#allocation5]  }
   0x5   :  { %s33_s12 = sshll.u32 %s1670_s11, 4  ;;  %s34_s12 = int_to_ptr.vmem [resolvable:$true] %s33_s12 }
   0x6   :  { %s1614_s13 = scalar_lea.vmem %s34_s12, 14336  ;;  %p1619_p1 = scmp.lt.s32.totalorder %s34_s12, %s34_s12 }
   0x7   :  { %p1615_p0 = scmp.ne.s32.totalorder %s34_s12, %s1614_s13  ;;  %p1620_p2 = scmp.lt.s32.totalorder %s1614_s13, %s1614_s13 }
   0x9   :  { %p1621_p3 = por %p1620_p2, %p1619_p1 }
   0xb   :  { %p1622_p4 = pnand %p1621_p3, %p1615_p0 }
   0xd   :  { %1625 = shalt.err (!%p1622_p4)
}
   0xe   :  { %s1671_s14 = smov 128   ;;  %s1672_s15 = smov 8  }
   0xf   :  { %39 = dma.hbm_to_vmem [thread:$0]  %s1789_s1, 14336, %s34_s12, [#allocation6], %s1671_s14, %s1671_s14, %s1672_s15  }
  0x10   :  { %s1673_s6 = smov [#allocation3]   ;;  %s1674_s19 = smov [#allocation7]  }
  0x11   :  { %s24_s18 = sshll.u32 %s1673_s6, 4  ;;  %s47_s20 = sshll.u32 %s1674_s19, 4  ;;  %s25_s18 = int_to_ptr.vmem [resolvable:$true] %s24_s18  ;;  %s48_s20 = int_to_ptr.vmem [resolvable:$true] %s47_s20 }
  0x12   :  { %s1634_s21 = scalar_lea.vmem %s25_s18, 448  ;;  %p1639_p6 = scmp.lt.s32.totalorder %s25_s18, %s25_s18 }
  0x13   :  { %p1635_p5 = scmp.ne.s32.totalorder %s25_s18, %s1634_s21  ;;  %p1640_p7 = scmp.lt.s32.totalorder %s1634_s21, %s1634_s21 }
  0x15   :  { %p1641_p8 = por %p1640_p7, %p1639_p6 }
  0x17   :  { %p1642_p9 = pnand %p1641_p8, %p1635_p5 }
  0x19   :  { %1645 = shalt.err (!%p1642_p9)
}
  0x1a   :  { %27 = dma.hbm_to_vmem [thread:$0]  %s1788_s0, 448, %s25_s18, [#allocation4]  }
  0x1b   :  { %s1654_s24 = scalar_lea.vmem %s48_s20, 2048  ;;  %p1659_p11 = scmp.lt.s32.totalorder %s48_s20, %s48_s20 }
  0x1c   :  { %p1655_p10 = scmp.ne.s32.totalorder %s48_s20, %s1654_s24  ;;  %p1660_p12 = scmp.lt.s32.totalorder %s1654_s24, %s1654_s24 }
  0x1e   :  { %p1661_p13 = por %p1660_p12, %p1659_p11 }
  0x20   :  { %p1662_p0 = pnand %p1661_p13, %p1655_p10 }
  0x22   :  { %1665 = shalt.err (!%p1662_p0)
}
  0x23   :  { %s1675_s1 = smov 64   ;;  %s1676_s25 = smov 4  }
  0x24   :  { %53 = dma.hbm_to_vmem [thread:$0]  %s1791_s3, 2048, %s48_s20, [#allocation6], %s1675_s1, %s1675_s1, %s1676_s25  }
  0x25   :  { %1666 = dma.done.wait [#allocation4], 448  }
  0x26   :  { %1667 = vsyncadd [#allocation4], 4294966848 }
  0x27   :  { %1668 = dma.done.wait [#allocation6], 16384  }
  0x28   :  { %1669 = vsyncadd [#allocation6], 4294950912  ;;  %v1677_v1 = vmov 0   ;;  %v1405_v2 = vld [vmem:[#allocation5 + $0x74] ss:$8 sps:$4 sm:$0xff]   ;;  %v74_v48 = vld [vmem:[#allocation3] sm:$0xff] }
  0x29   :  { %1404 = vset.pattern.permute.xlu0 %v1677_v1  ;;  %v1407_v3 = vld [vmem:[#allocation5 + $0x70] ss:$8 sps:$4 sm:$0xff]   ;;  %787 = vmatprep.subr.bf16.mxu0 %v1405_v2  ;;  %v1408_v4 = vld [vmem:[#allocation5 + $0x174] ss:$8 sps:$4 sm:$0xff]   ;;  %v1411_v6 = vld [vmem:[#allocation5 + $0x64] ss:$8 sps:$4 sm:$0xff]   ;;  %v1237_v50 = vcombine.high %v74_v48, %v74_v48 }
  0x2a   :  { %v1410_v5 = vld [vmem:[#allocation5 + $0x170] ss:$8 sps:$4 sm:$0xff]   ;;  %788 = vmatpush1.bf16.msra.mxu0 %v1407_v3  ;;  %v1413_v7 = vld [vmem:[#allocation5 + $0x60] ss:$8 sps:$4 sm:$0xff]   ;;  %828 = vmatprep.subr.bf16.mxu1 %v1408_v4  ;;  %v1414_v8 = vld [vmem:[#allocation5 + $0x164] ss:$8 sps:$4 sm:$0xff]  }
  0x2b   :  { %829 = vmatpush1.bf16.msra.mxu1 %v1410_v5  ;;  %789 = vmatprep.subr.bf16.mxu0 %v1411_v6  ;;  %v1416_v9 = vld [vmem:[#allocation5 + $0x160] ss:$8 sps:$4 sm:$0xff]   ;;  %v1417_v10 = vld [vmem:[#allocation5 + $0x54] ss:$8 sps:$4 sm:$0xff]   ;;  %v1419_v11 = vld [vmem:[#allocation5 + $0x50] ss:$8 sps:$4 sm:$0xff]  }
  0x2c   :  { %830 = vmatprep.subr.bf16.mxu1 %v1414_v8  ;;  %v1420_v12 = vld [vmem:[#allocation5 + $0x154] ss:$8 sps:$4 sm:$0xff]   ;;  %v1423_v13 = vld [vmem:[#allocation5 + $0x44] ss:$8 sps:$4 sm:$0xff]   ;;  %v1422_v14 = vld [vmem:[#allocation5 + $0x150] ss:$8 sps:$4 sm:$0xff]   ;;  %819 = vmatprep.mubr.bf16.mxu0 %v1237_v50  ;;  %v1236_v8 = vcombine.low %v74_v48, %v74_v48 }
  0x2d   :  { %v1426_v15 = vld [vmem:[#allocation5 + $0x144] ss:$8 sps:$4 sm:$0xff]   ;;  %v1425_v16 = vld [vmem:[#allocation5 + $0x40] ss:$8 sps:$4 sm:$0xff]   ;;  %v1429_v17 = vld [vmem:[#allocation5 + $0x34] ss:$8 sps:$4 sm:$0xff]  }
  0x2e   :  { %790 = vmatpush1.bf16.msra.mxu0 %v1413_v7  ;;  %v1428_v18 = vld [vmem:[#allocation5 + $0x140] ss:$8 sps:$4 sm:$0xff]   ;;  %v1432_v19 = vld [vmem:[#allocation5 + $0x134] ss:$8 sps:$4 sm:$0xff]   ;;  %v1431_v20 = vld [vmem:[#allocation5 + $0x30] ss:$8 sps:$4 sm:$0xff]  }
  0x2f   :  { %791 = vmatprep.subr.bf16.mxu0 %v1417_v10  ;;  %831 = vmatpush1.bf16.msra.mxu1 %v1416_v9  ;;  %v1435_v21 = vld [vmem:[#allocation5 + $0x24] ss:$8 sps:$4 sm:$0xff]   ;;  %v1434_v22 = vld [vmem:[#allocation5 + $0x130] ss:$8 sps:$4 sm:$0xff]   ;;  %v1437_v24 = vld [vmem:[#allocation5 + $0x20] ss:$8 sps:$4 sm:$0xff]  }
  0x30   :  { %832 = vmatprep.subr.bf16.mxu1 %v1420_v12  ;;  %v1438_v23 = vld [vmem:[#allocation5 + $0x124] ss:$8 sps:$4 sm:$0xff]   ;;  %v1441_v25 = vld [vmem:[#allocation5 + $0x14] ss:$8 sps:$4 sm:$0xff]   ;;  %v1440_v26 = vld [vmem:[#allocation5 + $0x120] ss:$8 sps:$4 sm:$0xff]  }
  0x31   :  { %v1444_v27 = vld [vmem:[#allocation5 + $0x114] ss:$8 sps:$4 sm:$0xff]   ;;  %v1443_v28 = vld [vmem:[#allocation5 + $0x10] ss:$8 sps:$4 sm:$0xff]   ;;  %v1447_v29 = vld [vmem:[#allocation5 + $0x4] ss:$8 sps:$4 sm:$0xff]  }
  0x32   :  { %792 = vmatpush1.bf16.msra.mxu0 %v1419_v11  ;;  %v1446_v30 = vld [vmem:[#allocation5 + $0x110] ss:$8 sps:$4 sm:$0xff]   ;;  %v1450_v31 = vld [vmem:[#allocation5 + $0x104] ss:$8 sps:$4 sm:$0xff]   ;;  %v1449_v32 = vld [vmem:[#allocation5] ss:$8 sps:$4 sm:$0xff]  }
  0x33   :  { %793 = vmatprep.subr.bf16.mxu0 %v1423_v13  ;;  %833 = vmatpush1.bf16.msra.mxu1 %v1422_v14  ;;  %v1453_v33 = vld [vmem:[#allocation5 + $0xf4] ss:$8 sps:$4 sm:$0xff]   ;;  %v1452_v34 = vld [vmem:[#allocation5 + $0x100] ss:$8 sps:$4 sm:$0xff]   ;;  %v1455_v36 = vld [vmem:[#allocation5 + $0xf0] ss:$8 sps:$4 sm:$0xff]  }
  0x34   :  { %834 = vmatprep.subr.bf16.mxu1 %v1426_v15  ;;  %v1456_v35 = vld [vmem:[#allocation5 + $0x1f4] ss:$8 sps:$4 sm:$0xff]   ;;  %v1459_v37 = vld [vmem:[#allocation5 + $0xe4] ss:$8 sps:$4 sm:$0xff]   ;;  %v1458_v38 = vld [vmem:[#allocation5 + $0x1f0] ss:$8 sps:$4 sm:$0xff]  }
  0x35   :  { %v1462_v39 = vld [vmem:[#allocation5 + $0x1e4] ss:$8 sps:$4 sm:$0xff]   ;;  %v1461_v40 = vld [vmem:[#allocation5 + $0xe0] ss:$8 sps:$4 sm:$0xff]   ;;  %v1465_v41 = vld [vmem:[#allocation5 + $0xd4] ss:$8 sps:$4 sm:$0xff]  }
  0x36   :  { %794 = vmatpush1.bf16.msra.mxu0 %v1425_v16  ;;  %v1464_v42 = vld [vmem:[#allocation5 + $0x1e0] ss:$8 sps:$4 sm:$0xff]   ;;  %v1468_v43 = vld [vmem:[#allocation5 + $0x1d4] ss:$8 sps:$4 sm:$0xff]   ;;  %v1467_v44 = vld [vmem:[#allocation5 + $0xd0] ss:$8 sps:$4 sm:$0xff]  }
  0x37   :  { %795 = vmatprep.subr.bf16.mxu0 %v1429_v17  ;;  %835 = vmatpush1.bf16.msra.mxu1 %v1428_v18  ;;  %v1471_v45 = vld [vmem:[#allocation5 + $0xc4] ss:$8 sps:$4 sm:$0xff]   ;;  %v1470_v46 = vld [vmem:[#allocation5 + $0x1d0] ss:$8 sps:$4 sm:$0xff]   ;;  %v1473_v49 = vld [vmem:[#allocation5 + $0xc0] ss:$8 sps:$4 sm:$0xff]  }
  0x38   :  { %836 = vmatprep.subr.bf16.mxu1 %v1432_v19  ;;  %v1474_v47 = vld [vmem:[#allocation5 + $0x1c4] ss:$8 sps:$4 sm:$0xff]   ;;  %v1477_v51 = vld [vmem:[#allocation5 + $0xb4] ss:$8 sps:$4 sm:$0xff]   ;;  %v1476_v53 = vld [vmem:[#allocation5 + $0x1c0] ss:$8 sps:$4 sm:$0xff]  }
  0x39   :  { %v75_v52 = vld [vmem:[#allocation3 + $0x8] sm:$0xff]  ;;  %v1480_v55 = vld [vmem:[#allocation5 + $0x1b4] ss:$8 sps:$4 sm:$0xff]   ;;  %v1485_v60 = vld [vmem:[#allocation5 + $0xa0] ss:$8 sps:$4 sm:$0xff]   ;;  %vm1149_vm0 = vcmask 7168  }
  0x3a   :  { %796 = vmatpush1.bf16.msra.mxu0 %v1431_v20  ;;  %v1239_v54 = vcombine.high %v75_v52, %v75_v52  ;;  %v1479_v56 = vld [vmem:[#allocation5 + $0xb0] ss:$8 sps:$4 sm:$0xff]   ;;  %v1483_v57 = vld [vmem:[#allocation5 + $0xa4] ss:$8 sps:$4 sm:$0xff]   ;;  %v1489_v61 = vld [vmem:[#allocation5 + $0x94] ss:$8 sps:$4 sm:$0xff]   ;;  %v1238_v11 = vcombine.low %v75_v52, %v75_v52 }
  0x3b   :  { %797 = vmatprep.subr.bf16.mxu0 %v1435_v21  ;;  %837 = vmatpush1.bf16.msra.mxu1 %v1434_v22  ;;  %v1482_v58 = vld [vmem:[#allocation5 + $0x1b0] ss:$8 sps:$4 sm:$0xff]   ;;  %v1486_v59 = vld [vmem:[#allocation5 + $0x1a4] ss:$8 sps:$4 sm:$0xff]   ;;  %v1488_v62 = vld [vmem:[#allocation5 + $0x1a0] ss:$8 sps:$4 sm:$0xff]  }
  0x3c   :  { %838 = vmatprep.subr.bf16.mxu1 %v1438_v23  ;;  %860 = vmatprep.mubr.bf16.mxu1 %v1239_v54  ;;  %v1492_v63 = vld [vmem:[#allocation5 + $0x194] ss:$8 sps:$4 sm:$0xff]   ;;  %v1491_v0 = vld [vmem:[#allocation5 + $0x90] ss:$8 sps:$4 sm:$0xff]   ;;  %v1495_v2 = vld [vmem:[#allocation5 + $0x84] ss:$8 sps:$4 sm:$0xff]  }
  0x3d   :  { %v1494_v3 = vld [vmem:[#allocation5 + $0x190] ss:$8 sps:$4 sm:$0xff]   ;;  %v1498_v4 = vld [vmem:[#allocation5 + $0x184] ss:$8 sps:$4 sm:$0xff]   ;;  %v1497_v5 = vld [vmem:[#allocation5 + $0x80] ss:$8 sps:$4 sm:$0xff]  }
  0x3e   :  { %798 = vmatpush1.bf16.msra.mxu0 %v1437_v24  ;;  %v1505_v6 = vld [vmem:[#allocation5 + $0x274] ss:$8 sps:$4 sm:$0xff]   ;;  %v1502_v7 = vld [vmem:[#allocation5 + $0x180] ss:$8 sps:$4 sm:$0xff]   ;;  %v1503_v10 = vld [vmem:[#allocation5 + $0x270] ss:$8 sps:$4 sm:$0xff]  }
  0x3f   :  { %799 = vmatprep.subr.bf16.mxu0 %v1441_v25  ;;  %839 = vmatpush1.bf16.msra.mxu1 %v1440_v26  ;;  %v1531_v9 = vld [vmem:[#allocation5 + $0x374] ss:$8 sps:$4 sm:$0xff]   ;;  %v1510_v12 = vld [vmem:[#allocation5 + $0x264] ss:$8 sps:$4 sm:$0xff]   ;;  %v1529_v13 = vld [vmem:[#allocation5 + $0x370] ss:$8 sps:$4 sm:$0xff]  }
  0x40   :  { %840 = vmatprep.subr.bf16.mxu1 %v1444_v27  ;;  %v1537_v14 = vld [vmem:[#allocation5 + $0x364] ss:$8 sps:$4 sm:$0xff]   ;;  %v1508_v15 = vld [vmem:[#allocation5 + $0x260] ss:$8 sps:$4 sm:$0xff]   ;;  %v1513_v16 = vld [vmem:[#allocation5 + $0x254] ss:$8 sps:$4 sm:$0xff]  }
  0x41   :  { %v1535_v17 = vld [vmem:[#allocation5 + $0x360] ss:$8 sps:$4 sm:$0xff]   ;;  %v1543_v18 = vld [vmem:[#allocation5 + $0x354] ss:$8 sps:$4 sm:$0xff]   ;;  %v1511_v19 = vld [vmem:[#allocation5 + $0x250] ss:$8 sps:$4 sm:$0xff]  }
  0x42   :  { %800 = vmatpush1.bf16.msra.mxu0 %v1443_v28  ;;  %v1516_v20 = vld [vmem:[#allocation5 + $0x244] ss:$8 sps:$4 sm:$0xff]   ;;  %v1514_v21 = vld [vmem:[#allocation5 + $0x240] ss:$8 sps:$4 sm:$0xff]   ;;  %v1541_v22 = vld [vmem:[#allocation5 + $0x350] ss:$8 sps:$4 sm:$0xff]  }
  0x43   :  { %801 = vmatprep.subr.bf16.mxu0 %v1447_v29  ;;  %841 = vmatpush1.bf16.msra.mxu1 %v1446_v30  ;;  %v1549_v23 = vld [vmem:[#allocation5 + $0x344] ss:$8 sps:$4 sm:$0xff]   ;;  %v1519_v24 = vld [vmem:[#allocation5 + $0x234] ss:$8 sps:$4 sm:$0xff]   ;;  %v1547_v25 = vld [vmem:[#allocation5 + $0x340] ss:$8 sps:$4 sm:$0xff]  }
  0x44   :  { %842 = vmatprep.subr.bf16.mxu1 %v1450_v31  ;;  %v1555_v26 = vld [vmem:[#allocation5 + $0x334] ss:$8 sps:$4 sm:$0xff]   ;;  %v1517_v28 = vld [vmem:[#allocation5 + $0x230] ss:$8 sps:$4 sm:$0xff]   ;;  %v1522_v29 = vld [vmem:[#allocation5 + $0x224] ss:$8 sps:$4 sm:$0xff]  }
  0x45   :  { %v1742_v27 = vld [vmem:[#allocation3 + $0x10] sm:$0xff]  ;;  %v1561_v31 = vld [vmem:[#allocation5 + $0x324] ss:$8 sps:$4 sm:$0xff]   ;;  %v1550_v50 = vld [vmem:[#allocation5 + $0x2c0] ss:$8 sps:$4 sm:$0xff]  }
  0x46   :  { %802 = vmatpush1.bf16.msra.mxu0 %v1449_v32  ;;  %v1553_v30 = vld [vmem:[#allocation5 + $0x330] ss:$8 sps:$4 sm:$0xff]   ;;  %v1520_v32 = vld [vmem:[#allocation5 + $0x220] ss:$8 sps:$4 sm:$0xff]  }
  0x47   :  { %803 = vmatprep.subr.bf16.mxu0 %v1453_v33  ;;  %843 = vmatpush1.bf16.msra.mxu1 %v1452_v34  ;;  %v1525_v33 = vld [vmem:[#allocation5 + $0x214] ss:$8 sps:$4 sm:$0xff]   ;;  %v1559_v34 = vld [vmem:[#allocation5 + $0x320] ss:$8 sps:$4 sm:$0xff]   ;;  %v1544_v48 = vld [vmem:[#allocation5 + $0x2d0] ss:$8 sps:$4 sm:$0xff]  }
  0x48   :  { %844 = vmatprep.subr.bf16.mxu1 %v1456_v35  ;;  %v1567_v35 = vld [vmem:[#allocation5 + $0x314] ss:$8 sps:$4 sm:$0xff]   ;;  %v1556_v52 = vld [vmem:[#allocation5 + $0x2b0] ss:$8 sps:$4 sm:$0xff]   ;;  %v1562_v54 = vld [vmem:[#allocation5 + $0x2a0] ss:$8 sps:$4 sm:$0xff]  }
  0x4a   :  { %804 = vmatpush2.bf16.msra.mxu0 %v1455_v36  ;;  %v1523_v36 = vld [vmem:[#allocation5 + $0x210] ss:$8 sps:$4 sm:$0xff]  }
  0x4b   :  { %805 = vmatprep.subr.bf16.mxu0 %v1459_v37  ;;  %845 = vmatpush2.bf16.msra.mxu1 %v1458_v38  ;;  %v1528_v37 = vld [vmem:[#allocation5 + $0x204] ss:$8 sps:$4 sm:$0xff]   ;;  %v1565_v38 = vld [vmem:[#allocation5 + $0x310] ss:$8 sps:$4 sm:$0xff]  }
  0x4c   :  { %846 = vmatprep.subr.bf16.mxu1 %v1462_v39  ;;  %v1573_v39 = vld [vmem:[#allocation5 + $0x304] ss:$8 sps:$4 sm:$0xff]  }
  0x4e   :  { %806 = vmatpush2.bf16.msra.mxu0 %v1461_v40  ;;  %v1526_v40 = vld [vmem:[#allocation5 + $0x200] ss:$8 sps:$4 sm:$0xff]  }
  0x4f   :  { %807 = vmatprep.subr.bf16.mxu0 %v1465_v41  ;;  %847 = vmatpush2.bf16.msra.mxu1 %v1464_v42  ;;  %v1534_v41 = vld [vmem:[#allocation5 + $0x2f4] ss:$8 sps:$4 sm:$0xff]   ;;  %v1571_v42 = vld [vmem:[#allocation5 + $0x300] ss:$8 sps:$4 sm:$0xff]  }
  0x50   :  { %848 = vmatprep.subr.bf16.mxu1 %v1468_v43  ;;  %v1532_v43 = vld [vmem:[#allocation5 + $0x2f0] ss:$8 sps:$4 sm:$0xff]  }
  0x52   :  { %808 = vmatpush2.bf16.msra.mxu0 %v1467_v44  ;;  %v1540_v44 = vld [vmem:[#allocation5 + $0x2e4] ss:$8 sps:$4 sm:$0xff]  }
  0x53   :  { %809 = vmatprep.subr.bf16.mxu0 %v1471_v45  ;;  %849 = vmatpush2.bf16.msra.mxu1 %v1470_v46  ;;  %v1577_v45 = vld [vmem:[#allocation3 + $0x18] ss:$0 sps:$4 sm:$0xff]   ;;  %v1538_v46 = vld [vmem:[#allocation5 + $0x2e0] ss:$8 sps:$4 sm:$0xff]  }
  0x54   :  { %850 = vmatprep.subr.bf16.mxu1 %v1474_v47  ;;  %v1546_v47 = vld [vmem:[#allocation5 + $0x2d4] ss:$8 sps:$4 sm:$0xff]  }
  0x56   :  { %810 = vmatpush2.bf16.msra.mxu0 %v1473_v49  ;;  %v1552_v49 = vld [vmem:[#allocation5 + $0x2c4] ss:$8 sps:$4 sm:$0xff]  }
  0x57   :  { %811 = vmatprep.subr.bf16.mxu0 %v1477_v51  ;;  %851 = vmatpush2.bf16.msra.mxu1 %v1476_v53  ;;  %v1558_v51 = vld [vmem:[#allocation5 + $0x2b4] ss:$8 sps:$4 sm:$0xff]   ;;  %v1564_v53 = vld [vmem:[#allocation5 + $0x2a4] ss:$8 sps:$4 sm:$0xff]  }
  0x58   :  { %852 = vmatprep.subr.bf16.mxu1 %v1480_v55  ;;  %v1570_v55 = vld [vmem:[#allocation5 + $0x294] ss:$8 sps:$4 sm:$0xff]  }
  0x5a   :  { %812 = vmatpush2.bf16.msra.mxu0 %v1479_v56  ;;  %v1568_v56 = vld [vmem:[#allocation5 + $0x290] ss:$8 sps:$4 sm:$0xff]  }
  0x5b   :  { %813 = vmatprep.subr.bf16.mxu0 %v1483_v57  ;;  %853 = vmatpush2.bf16.msra.mxu1 %v1482_v58  ;;  %v1576_v57 = vld [vmem:[#allocation5 + $0x284] ss:$8 sps:$4 sm:$0xff]   ;;  %v1574_v58 = vld [vmem:[#allocation5 + $0x280] ss:$8 sps:$4 sm:$0xff]  }
  0x5c   :  { %854 = vmatprep.subr.bf16.mxu1 %v1486_v59  ;;  %v1240_v59 = vcombine.low %v1742_v27, %v1742_v27 }
  0x5e   :  { %814 = vmatpush2.bf16.msra.mxu0 %v1485_v60  ;;  %v1580_v60 = vld [vmem:[#allocation7 + $0x78] sm:$0xff]  }
  0x5f   :  { %815 = vmatprep.subr.bf16.mxu0 %v1489_v61  ;;  %855 = vmatpush2.bf16.msra.mxu1 %v1488_v62  ;;  %v1581_v61 = vld [vmem:[#allocation7 + $0x38] sm:$0xff]   ;;  %v1582_v62 = vld [vmem:[#allocation7 + $0x70] sm:$0xff]  }
  0x60   :  { %856 = vmatprep.subr.bf16.mxu1 %v1492_v63  ;;  %v1583_v63 = vld [vmem:[#allocation7 + $0x30] sm:$0xff]  }
  0x62   :  { %816 = vmatpush2.bf16.msra.mxu0 %v1491_v0  ;;  %v1584_v0 = vld [vmem:[#allocation7 + $0x68] sm:$0xff]  }
  0x63   :  { %817 = vmatprep.subr.bf16.mxu0 %v1495_v2  ;;  %857 = vmatpush2.bf16.msra.mxu1 %v1494_v3  ;;  %v1585_v2 = vld [vmem:[#allocation7 + $0x28] sm:$0xff]   ;;  %v1586_v3 = vld [vmem:[#allocation7 + $0x60] sm:$0xff]  }
  0x64   :  { %858 = vmatprep.subr.bf16.mxu1 %v1498_v4  ;;  %v1587_v4 = vld [vmem:[#allocation7 + $0x20] sm:$0xff]  }
  0x66   :  { %818 = vmatpush2.bf16.msra.mxu0 %v1497_v5  ;;  %v1588_v5 = vld [vmem:[#allocation7 + $0x58] sm:$0xff]  }
  0x67   :  { %869 = vmatprep.subr.bf16.mxu0 %v1505_v6  ;;  %859 = vmatpush2.bf16.msra.mxu1 %v1502_v7  ;;  %v1589_v6 = vld [vmem:[#allocation7 + $0x18] sm:$0xff]   ;;  %v1590_v7 = vld [vmem:[#allocation7 + $0x50] sm:$0xff]  }
  0x68   :  { %910 = vmatprep.subr.bf16.mxu1 %v1531_v9  ;;  %v1592_v9 = vld [vmem:[#allocation7 + $0x48] sm:$0xff]  }
  0x69   :  { %820 = vmatmul.mubr.bf16.vlgmr.msra.gmra.mxu0 %v1236_v8  ;;  %v1591_v8 = vld [vmem:[#allocation7 + $0x10] sm:$0xff]  }
  0x6a   :  { %870 = vmatpush1.bf16.msra.mxu0 %v1503_v10  ;;  %861 = vmatmul.mubr.bf16.vlgmr.msra.gmra.mxu1 %v1238_v11  ;;  %v1593_v10 = vld [vmem:[#allocation7 + $0x8] sm:$0xff]   ;;  %v1594_v11 = vld [vmem:[#allocation7 + $0x40] sm:$0xff]  }
  0x6b   :  { %871 = vmatprep.subr.bf16.mxu0 %v1510_v12  ;;  %911 = vmatpush1.bf16.msra.mxu1 %v1529_v13  ;;  %v1595_v12 = vld [vmem:[#allocation7] sm:$0xff]  }
  0x6c   :  { %942 = vmatprep.mubr.bf16.mxu1 %v1677_v1  ;;  %912 = vmatprep.subr.bf16.mxu1 %v1537_v14  ;;  %v1241_v1 = vcombine.high %v1742_v27, %v1742_v27 }
  0x6e   :  { %872 = vmatpush1.bf16.msra.mxu0 %v1508_v15  ;;  %901 = vmatprep.mubr.bf16.mxu0 %v1241_v1 }
  0x6f   :  { %873 = vmatprep.subr.bf16.mxu0 %v1513_v16  ;;  %913 = vmatpush1.bf16.msra.mxu1 %v1535_v17 }
  0x70   :  { %914 = vmatprep.subr.bf16.mxu1 %v1543_v18 }
  0x72   :  { %874 = vmatpush1.bf16.msra.mxu0 %v1511_v19 }
  0x73   :  { %875 = vmatprep.subr.bf16.mxu0 %v1516_v20  ;;  %915 = vmatpush1.bf16.msra.mxu1 %v1541_v22 }
  0x74   :  { %916 = vmatprep.subr.bf16.mxu1 %v1549_v23 }
  0x76   :  { %876 = vmatpush1.bf16.msra.mxu0 %v1514_v21 }
  0x77   :  { %877 = vmatprep.subr.bf16.mxu0 %v1519_v24  ;;  %917 = vmatpush1.bf16.msra.mxu1 %v1547_v25  ;;  %v192_v25 = vlaneseq }
  0x78   :  { %918 = vmatprep.subr.bf16.mxu1 %v1555_v26 }
  0x79   :  { %v1748_v26 = vshrl.u32 %v192_v25, 7 }
  0x7a   :  { %878 = vmatpush1.bf16.msra.mxu0 %v1517_v28  ;;  %v190_v28 = vld [vmem:[%s1790_s2] sm:$0x3] }
  0x7b   :  { %879 = vmatprep.subr.bf16.mxu0 %v1522_v29  ;;  %919 = vmatpush1.bf16.msra.mxu1 %v1553_v30  ;;  %v194_v27 = vsub.s32 0, %v1748_v26  ;;  %v198_v1 = vsub.s32 1, %v1748_v26 }
  0x7c   :  { %920 = vmatprep.subr.bf16.mxu1 %v1561_v31 }
  0x7d   :  { %v195_v29 = vrot.slane %v190_v28, %v194_v27  ;;  %v199_v30 = vrot.slane %v190_v28, %v198_v1  ;;  %v1181_v27 = vld [vmem:[%s1795_s7] sm:$0xff]  ;;  %v1195_v1 = vadd.s32 8, %v1748_v26 }
  0x7e   :  { %880 = vmatpush1.bf16.msra.mxu0 %v1520_v32 }
  0x7f   :  { %881 = vmatprep.subr.bf16.mxu0 %v1525_v33  ;;  %921 = vmatpush1.bf16.msra.mxu1 %v1559_v34  ;;  %vm1197_vm1 = vcmp.lt.s32.totalorder %v1195_v1, 10 }
  0x80   :  { %922 = vmatprep.subr.bf16.mxu1 %v1567_v35 }
  0x82   :  { %882 = vmatpush1.bf16.msra.mxu0 %v1523_v36 }
  0x83   :  { %883 = vmatprep.subr.bf16.mxu0 %v1528_v37  ;;  %923 = vmatpush1.bf16.msra.mxu1 %v1565_v38 }
  0x84   :  { %924 = vmatprep.subr.bf16.mxu1 %v1573_v39 }
  0x86   :  { %884 = vmatpush1.bf16.msra.mxu0 %v1526_v40 }
  0x87   :  { %885 = vmatprep.subr.bf16.mxu0 %v1534_v41  ;;  %925 = vmatpush1.bf16.msra.mxu1 %v1571_v42 }
  0x88   :  { %1374 = vmatprep.subr.bf16.mxu1 %v1580_v60 }
  0x8a   :  { %886 = vmatpush2.bf16.msra.mxu0 %v1532_v43  ;;  %943 = vmatmul.mubr.bf16.vlgmr.msra.gmra.mxu1 %v1577_v45 }
  0x8b   :  { %887 = vmatprep.subr.bf16.mxu0 %v1540_v44  ;;  %1375 = vmatpush3.bf16.msra.mxu1 %v1581_v61 }
  0x8c   :  { %1376 = vmatprep.subr.bf16.mxu1 %v1582_v62 }
  0x8e   :  { %888 = vmatpush2.bf16.msra.mxu0 %v1538_v46 }
  0x8f   :  { %889 = vmatprep.subr.bf16.mxu0 %v1546_v47  ;;  %1377 = vmatpush3.bf16.msra.mxu1 %v1583_v63 }
  0x90   :  { %1378 = vmatprep.subr.bf16.mxu1 %v1584_v0 }
  0x92   :  { %890 = vmatpush2.bf16.msra.mxu0 %v1544_v48 }
  0x93   :  { %891 = vmatprep.subr.bf16.mxu0 %v1552_v49  ;;  %1379 = vmatpush3.bf16.msra.mxu1 %v1585_v2  ;;  %v1355_v49 = vld [vmem:[%s1792_s4] ss:$0 sm:$0xff] }
  0x94   :  { %1380 = vmatprep.subr.bf16.mxu1 %v1586_v3 }
  0x96   :  { %892 = vmatpush2.bf16.msra.mxu0 %v1550_v50 }
  0x97   :  { %893 = vmatprep.subr.bf16.mxu0 %v1558_v51  ;;  %1381 = vmatpush3.bf16.msra.mxu1 %v1587_v4 }
  0x98   :  { %1382 = vmatprep.subr.bf16.mxu1 %v1588_v5 }
  0x9a   :  { %894 = vmatpush2.bf16.msra.mxu0 %v1556_v52 }
  0x9b   :  { %895 = vmatprep.subr.bf16.mxu0 %v1564_v53  ;;  %1383 = vmatpush3.bf16.msra.mxu1 %v1589_v6 }
  0x9c   :  { %1384 = vmatprep.subr.bf16.mxu1 %v1590_v7 }
  0x9e   :  { %896 = vmatpush2.bf16.msra.mxu0 %v1562_v54  ;;  %v1372_v54 = vld [vmem:[%s1793_s5] ss:$0 sm:$0xff] }
  0x9f   :  { %897 = vmatprep.subr.bf16.mxu0 %v1570_v55  ;;  %1385 = vmatpush3.bf16.msra.mxu1 %v1591_v8 }
  0xa0   :  { %1386 = vmatprep.subr.bf16.mxu1 %v1592_v9 }
  0xa2   :  { %898 = vmatpush2.bf16.msra.mxu0 %v1568_v56 }
  0xa3   :  { %899 = vmatprep.subr.bf16.mxu0 %v1576_v57  ;;  %1387 = vmatpush3.bf16.msra.mxu1 %v1593_v10  ;;  %v1373_v57 = vld [vmem:[#allocation2] ss:$0 sm:$0xff] }
  0xa4   :  { %1388 = vmatprep.subr.bf16.mxu1 %v1594_v11 }
  0xa6   :  { %900 = vmatpush2.bf16.msra.mxu0 %v1574_v58 }
  0xa7   :  { %1389 = vmatpush3.bf16.msra.mxu1 %v1595_v12 }
  0xa9   :  { %902 = vmatmul.mubr.bf16.vlgmr.msra.gmra.mxu0 %v1240_v59 }
 0x129   :  { %v821_v13 = vpop.f32.mrf.mxu0 }
 0x12a   :  { %v862_v15 = vpop.f32.mrf.mxu1  ;;  %v822_v31 = vadd.f32 %v821_v13, %v195_v29  ;;  %v1190_v29 = vld [vmem:[%s1796_s8 + $0x8] sm:$0xff] }
 0x12b   :  { %v823_v14 = vpop.f32.mrf.mxu0 }
 0x12c   :  { %v864_v17 = vpop.f32.mrf.mxu1  ;;  %v824_v32 = vadd.f32 %v823_v14, %v199_v30  ;;  %v863_v33 = vadd.f32 %v862_v15, %v822_v31 }
 0x12d   :  { %v825_v16 = vpop.f32.mrf.mxu0 }
 0x12e   :  { %v866_v19 = vpop.f32.mrf.mxu1  ;;  %v865_v35 = vadd.f32 %v864_v17, %v824_v32  ;;  %v1189_v32 = vld [vmem:[%s1796_s8] sm:$0xff] }
 0x12f   :  { %v826_v18 = vpop.f32.mrf.mxu0 }
 0x130   :  { %v867_v20 = vpop.f32.mrf.mxu1 }
 0x14a   :  { %v944_v21 = vpop.f32.mrf.mxu1 }
 0x14c   :  { %v946_v22 = vpop.f32.mrf.mxu1 }
 0x14e   :  { %v948_v23 = vpop.f32.mrf.mxu1 }
 0x14f   :  { %v1182_v23 = vld [vmem:[%s1795_s7 + $0x8] sm:$0xff] }
 0x150   :  { %v949_v24 = vpop.f32.mrf.mxu1 }
 0x169   :  { %v903_v34 = vpop.f32.mrf.mxu0 }
 0x16a   :  { %v904_v36 = vadd.f32 %v903_v34, %v863_v33 }
 0x16b   :  { %v905_v37 = vpop.f32.mrf.mxu0 }
 0x16c   :  { %v945_v38 = vadd.f32 %v944_v21, %v904_v36  ;;  %v906_v39 = vadd.f32 %v905_v37, %v865_v35 }
 0x16d   :  { %v907_v40 = vpop.f32.mrf.mxu0 }
 0x16e   :  { %v947_v41 = vadd.f32 %v946_v22, %v906_v39  ;;  %v951_v42 = vmax.f32 %v945_v38, 0.0 }
 0x16f   :  { %v908_v43 = vpop.f32.mrf.mxu0 }
 0x170   :  { %v952_v44 = vmax.f32 %v947_v41, 0.0  ;;  %v953_v46 = vpack.c.bf16 %v951_v42, %v951_v42 }
 0x172   :  { %v954_v45 = vpack.c.bf16 %v952_v44, %v952_v44 }
 0x174   :  { %1122 = vmatprep.mubr.bf16.mxu1 %v954_v45 }
 0x175   :  { %1123 = vmatmul.mubr.bf16.vlgmr.msra.gmra.mxu1 %v953_v46 }
 0x235   :  { %v1390_v47 = vpop.f32.mrf.mxu1 }
 0x237   :  { %v1391_v48 = vpop.f32.mrf.mxu1 }
 0x238   :  { %v1392_v50 = vadd.f32 %v1391_v48, %v1390_v47 }
 0x239   :  { %v1393_v51 = vpop.f32.mrf.mxu1 }
 0x23a   :  { %v1125_v52 = vadd.f32 %v1392_v50, %v1355_v49 }
 0x23b   :  { %v1394_v53 = vpop.f32.mrf.mxu1 }
 0x23c   :  { %v1130_v55 = vmax.f32 %v1125_v52, 0.0 }
 0x23e   :  { %v1138_v56 = vmul.f32 %v1372_v54, %v1130_v55 }
 0x240   :  { %1139 = vadd.xlane.f32.xlu0 %v1138_v56 }
 0x2c9   :  { %v1140_v58 = vpop.xlane.xlu0 %1139 }
 0x2ca   :  { %v1148_v59 = vadd.f32 %v1373_v57, %v1140_v58 }
 0x2cc   :  { %v1150_v60 = vsel %vm1149_vm0, %v1148_v59, -inf }
 0x2cd   :  { %v1151_v61 = vrot.slane %v1150_v60, 4 }
 0x2cf   :  { %v1152_v62 = vmax.f32 %v1150_v60, %v1151_v61 }
 0x2d1   :  { %v1153_v63 = vrot.slane %v1152_v62, 2 }
 0x2d3   :  { %v1154_v0 = vmax.f32 %v1152_v62, %v1153_v63 }
 0x2d5   :  { %v1155_v2 = vrot.slane %v1154_v0, 1 }
 0x2d7   :  { %v1156_v3 = vmax.f32 %v1154_v0, %v1155_v2 }
 0x2d9   :  { %v1157_v4 = vsub.f32 %v1148_v59, %v1156_v3 }
 0x2db   :  { %v1158_v5 = vmul.f32 1.442695, %v1157_v4 }
 0x2dd   :  { %1596 = vpow2.f32 %v1158_v5 }
 0x2ea   :  { %v1597_v6 = vpop.eup %1596 }
 0x2eb   :  { %v1160_v7 = vsel %vm1149_vm0, %v1597_v6, 0.0 }
 0x2ec   :  { %v1161_v8 = vrot.slane %v1160_v7, 4 }
 0x2ee   :  { %v1162_v9 = vadd.f32 %v1161_v8, %v1160_v7 }
 0x2f0   :  { %v1163_v10 = vrot.slane %v1162_v9, 2 }
 0x2f2   :  { %v1164_v11 = vadd.f32 %v1163_v10, %v1162_v9 }
 0x2f4   :  { %v1165_v12 = vrot.slane %v1164_v11, 1 }
 0x2f6   :  { %v1166_v13 = vadd.f32 %v1165_v12, %v1164_v11 }
 0x2f8   :  { %1598 = vrcp.f32 %v1166_v13 }
 0x305   :  { %v1599_v14 = vpop.eup %1598 }
 0x306   :  { %v1168_v15 = vmul.f32 %v1599_v14, %v1597_v6 }
 0x308   :  { %1171 = vperm.xlu0 %1404, %v1168_v15  }
 0x383   :  { %v1172_v16 = vpop.permute.xlu0 %1171 }
 0x384   :  { %v1174_v17 = vmul.f32 %v1172_v16, %v1130_v55 }
 0x386   :  { %v1175_v18 = vrot.slane %v1174_v17, 4 }
 0x388   :  { %v1176_v19 = vadd.f32 %v1175_v18, %v1174_v17 }
 0x38a   :  { %v1177_v20 = vrot.slane %v1176_v19, 2 }
 0x38c   :  { %v1178_v21 = vadd.f32 %v1177_v20, %v1176_v19 }
 0x38e   :  { %v1179_v22 = vrot.slane %v1178_v21, 1 }
 0x390   :  { %v1180_v24 = vadd.f32 %v1179_v22, %v1178_v21 }
 0x392   :  { %v1184_v25 = vmul.f32 %v1182_v23, %v1180_v24  ;;  %v1183_v28 = vmul.f32 %v1181_v27, %v1180_v24 }
 0x394   :  { %1187 = vadd.xlane.f32.xlu1 %v1184_v25 }
 0x398   :  { %1185 = vadd.xlane.f32.xlu1 %v1183_v28 }
 0x41d   :  { %v1188_v30 = vpop.xlane.xlu1 %1187 }
 0x41e   :  { %v1192_v31 = vadd.f32 %v1190_v29, %v1188_v30 }
 0x420   :  { %v1199_v33 = vsel %vm1197_vm1, %v1192_v31, -1e+30 }
 0x421   :  { %v1186_v34 = vpop.xlane.xlu1 %1185  ;;  %v1201_v36 = vsel %vm1149_vm0, %v1199_v33, -inf }
 0x422   :  { %v1191_v35 = vadd.f32 %v1189_v32, %v1186_v34 }
 0x424   :  { %v1200_v37 = vsel %vm1149_vm0, %v1191_v35, -inf }
 0x425   :  { %v1202_v38 = vmax.f32 %v1200_v37, %v1201_v36 }
 0x427   :  { %v1203_v26 = vrot.slane %v1202_v38, 4 }
 0x429   :  { %v1204_v39 = vmax.f32 %v1202_v38, %v1203_v26 }
 0x42b   :  { %v1205_v40 = vrot.slane %v1204_v39, 2 }
 0x42d   :  { %v1206_v41 = vmax.f32 %v1204_v39, %v1205_v40 }
 0x42f   :  { %v1207_v42 = vrot.slane %v1206_v41, 1 }
 0x431   :  { %v1208_v43 = vmax.f32 %v1206_v41, %v1207_v42 }
 0x433   :  { %v1209_v44 = vsub.f32 %v1191_v35, %v1208_v43  ;;  %v1210_v45 = vsub.f32 %v1199_v33, %v1208_v43 }
 0x435   :  { %v1211_v46 = vmul.f32 1.442695, %v1209_v44  ;;  %v1213_v47 = vmul.f32 1.442695, %v1210_v45 }
 0x437   :  { %1600 = vpow2.f32 %v1211_v46 }
 0x438   :  { %1602 = vpow2.f32 %v1213_v47 }
 0x444   :  { %v1601_v48 = vpop.eup %1600 }
 0x445   :  { %v1603_v49 = vpop.eup %1602  ;;  %v1215_v50 = vsel %vm1149_vm0, %v1601_v48, 0.0 }
 0x446   :  { %v1216_v51 = vsel %vm1149_vm0, %v1603_v49, 0.0 }
 0x447   :  { %v1217_v52 = vadd.f32 %v1216_v51, %v1215_v50 }
 0x449   :  { %v1218_v53 = vrot.slane %v1217_v52, 4 }
 0x44b   :  { %v1219_v54 = vadd.f32 %v1218_v53, %v1217_v52 }
 0x44d   :  { %v1220_v55 = vrot.slane %v1219_v54, 2 }
 0x44f   :  { %v1221_v56 = vadd.f32 %v1220_v55, %v1219_v54 }
 0x451   :  { %v1222_v57 = vrot.slane %v1221_v56, 1 }
 0x453   :  { %v1223_v58 = vadd.f32 %v1222_v57, %v1221_v56 }
 0x455   :  { %1604 = vlog2.f32 %v1223_v58 }
 0x462   :  { %v1605_v59 = vpop.eup %1604 }
 0x463   :  { %v1225_v60 = vmul.f32 0.6931472, %v1605_v59 }
 0x465   :  { %v1226_v61 = vsub.f32 %v1209_v44, %v1225_v60  ;;  %v1227_v62 = vsub.f32 %v1210_v45, %v1225_v60 }
 0x467   :  { %1228 = vst.msk [vmem:[%s1797_s9] sm:$0xff] %vm1149_vm0, %v1226_v61  ;;  %1229 = vst.msk [vmem:[%s1797_s9 + $0x8] sm:$0xff] %vm1149_vm0, %v1227_v62 }
 0x468   :  { %1234 = vsyncpa [#allocation4], 1 }
 0x469   :  { %1235 = vsyncpa [#allocation6], 1 }

</bundles_post_ra>
